<compile_context>
chip_gen: v6e
topology: v6e:2x2x1
jax: 0.10.0
libtpu: 0.0.40
codegen_flags: <defaults>
</compile_context>

<pallas_src>
import functools

import jax
import jax.numpy as jnp
from jax.experimental import pallas as pl
from jax.experimental.pallas import tpu as pltpu

HIDDEN = 256
LANE = 128
SUBLANE = 8


def _round_up(x, m):
    return (x + m - 1) // m * m


def _choose_batch_tile(batch):
    """Pick the batch-tile size.

    Small batches: a single grid step, rows rounded to the 8-sublane granule.
    Large batches: multiples of 256 rows (v6e/v7x MXU granule; also fine on
    v5e), capped at 2048 (keeps f32 activations + double-buffered IO well
    under the v7x 64 MiB VMEM) and chosen so there are >= 2 grid steps (lets
    the "parallel" batch axis shard across v7x's two TensorCores).
    """
    if batch <= 256:
        return _round_up(max(batch, SUBLANE), SUBLANE)
    return min(2048, _round_up(pl.cdiv(batch, 2), 256))


def _actor_kernel(x_ref, w1_ref, w23_ref, b_ref, o_ref, *, max_action, a_pad):
    """Fused 3-layer MLP on one batch tile.

    x_ref   : (TB, S_pad)            bf16
    w1_ref  : (S_pad, 256)           bf16
    w23_ref : (256, 256 + A_pad)     bf16   [w2 | w3_pad]
    b_ref   : (1, 512 + A_pad)       f32    [b1 | b2 | b3_pad]
    o_ref   : (TB, A_pad)            f32 or bf16
    """
    h = HIDDEN

    # Layer 1: bf16 MXU matmul (state already bf16 in HBM), f32 accumulate.
    a1 = jnp.dot(x_ref[...], w1_ref[...], preferred_element_type=jnp.float32)
    a1 = jnp.maximum(a1 + b_ref[:, 0:h], 0.0)

    # Layer 2.
    a2 = jnp.dot(a1.astype(jnp.bfloat16), w23_ref[:, 0:h],
                 preferred_element_type=jnp.float32)
    a2 = jnp.maximum(a2 + b_ref[:, h:2 * h], 0.0)

    # Layer 3 (output lanes padded to A_pad -> unmasked lane-dense store).
    a3 = jnp.dot(a2.astype(jnp.bfloat16), w23_ref[:, h:h + a_pad],
                 preferred_element_type=jnp.float32)
    o_ref[...] = (max_action * jnp.tanh(a3 + b_ref[:, 2 * h:2 * h + a_pad])
                  ).astype(o_ref.dtype)


def pack_actor_params(params):
    """Pad + pack raw f32 params into the bf16/f32 slabs the kernel consumes."""
    w1, b1 = params["w1"], params["b1"]
    w2, b2 = params["w2"], params["b2"]
    w3, b3 = params["w3"], params["b3"]
    S = w1.shape[0]
    A = w3.shape[1]
    assert w1.shape[1] == HIDDEN and w2.shape == (HIDDEN, HIDDEN)
    assert w3.shape[0] == HIDDEN

    s_pad = _round_up(max(S, LANE), LANE)
    a_pad = _round_up(max(A, LANE), LANE)

    w1_p = jnp.zeros((s_pad, HIDDEN), jnp.bfloat16).at[:S, :].set(
        w1.astype(jnp.bfloat16))
    w3_p = jnp.zeros((HIDDEN, a_pad), jnp.bfloat16).at[:, :A].set(
        w3.astype(jnp.bfloat16))
    w23 = jnp.concatenate([w2.astype(jnp.bfloat16), w3_p], axis=1)

    b3_p = jnp.zeros((1, a_pad), jnp.float32).at[:, :A].set(
        b3.astype(jnp.float32))
    bias = jnp.concatenate(
        [b1.astype(jnp.float32), b2.astype(jnp.float32), b3_p], axis=1)

    return {"w1": w1_p, "w23": w23, "bias": bias,
            "state_dim": S, "action_dim": A, "s_pad": s_pad, "a_pad": a_pad}


def actor_forward(state, packed, max_action, *, out_dtype=jnp.float32,
                  trim_output=True):
    """Fused Actor forward pass.

    state: (B, state_dim) -> (B, action_dim) in `out_dtype` (default f32).
    Pass trim_output=False to receive the (B_pad, A_pad) lane-padded slab and
    skip the output slice copy; pass out_dtype=jnp.bfloat16 to halve output
    HBM traffic (tanh output is bounded by max_action, so bf16 is safe).
    """
    S = packed["state_dim"]
    A = packed["action_dim"]
    s_pad = packed["s_pad"]
    a_pad = packed["a_pad"]
    B = state.shape[0]

    tb = _choose_batch_tile(B)
    b_pad = _round_up(B, tb)

    # bf16 state DMA: fold the cast into the pad copy; skip padding entirely
    # when the shapes already match (no extra HBM round trip).
    x = state.astype(jnp.bfloat16)
    if (b_pad, s_pad) != (B, S):
        x = jnp.pad(x, ((0, b_pad - B), (0, s_pad - S)))

    kernel = functools.partial(_actor_kernel,
                               max_action=float(max_action), a_pad=a_pad)

    out_elt = jnp.dtype(out_dtype).itemsize
    weight_bytes = (packed["w1"].size * 2 + packed["w23"].size * 2
                    + packed["bias"].size * 4)
    cost = pl.CostEstimate(
        flops=2 * b_pad * (s_pad * HIDDEN + HIDDEN * HIDDEN + HIDDEN * a_pad),
        transcendentals=b_pad * a_pad,
        bytes_accessed=(b_pad * s_pad * 2 + weight_bytes
                        + b_pad * a_pad * out_elt),
    )

    # Per-step VMEM working set: double-buffered state/out tiles, (default)
    # double-buffered resident weight slabs, f32 activations. Bump the scoped
    # limit only when the default (16 MiB on v5e) could be too small.
    vmem_need = (2 * tb * s_pad * 2            # state tile (bf16), 2 buffers
                 + 2 * tb * a_pad * out_elt    # out tile, 2 buffers
                 + 2 * weight_bytes            # weight/bias slabs
                 + 2 * tb * HIDDEN * 4)        # f32 activations a1/a2
    compiler_kwargs = {}
    if vmem_need > 12 * 1024 * 1024:
        compiler_kwargs["vmem_limit_bytes"] = min(
            int(vmem_need * 1.5), 56 * 1024 * 1024)

    # TODO(synk): on v7x, pipeline_mode=pl.Buffered(1) on the three constant-
    # index weight/bias specs would reclaim their unused second pipeline
    # buffer (~320 KiB of headroom) when tb is pushed toward the VMEM ceiling.
    out = pl.pallas_call(
        kernel,
        out_shape=jax.ShapeDtypeStruct((b_pad, a_pad), out_dtype),
        grid_spec=pltpu.PrefetchScalarGridSpec(
            num_scalar_prefetch=0,
            grid=(b_pad // tb,),
            in_specs=[
                pl.BlockSpec((tb, s_pad), lambda i: (i, 0)),               # state tile
                pl.BlockSpec((s_pad, HIDDEN), lambda i: (0, 0)),           # w1 (resident)
                pl.BlockSpec((HIDDEN, HIDDEN + a_pad), lambda i: (0, 0)),  # [w2|w3]
                pl.BlockSpec((1, 2 * HIDDEN + a_pad), lambda i: (0, 0)),   # [b1|b2|b3]
            ],
            out_specs=pl.BlockSpec((tb, a_pad), lambda i: (i, 0)),
        ),
        compiler_params=pltpu.CompilerParams(
            dimension_semantics=("parallel",), **compiler_kwargs),
        cost_estimate=cost,
    )(x, packed["w1"], packed["w23"], packed["bias"])

    if trim_output:
        return out[:B, :A]
    return out


def init_actor_params(key, state_dim, action_dim, hidden=HIDDEN):
    """Deterministic init mimicking nn.Linear default (U[-1/sqrt(fan_in), +]).

    Weights are stored as (in_features, out_features) == PyTorch weight.T.
    """
    ks = jax.random.split(key, 6)

    def linear(kw, kb, fan_in, fan_out):
        bound = 1.0 / jnp.sqrt(float(fan_in))
        w = jax.random.uniform(kw, (fan_in, fan_out), jnp.float32, -bound, bound)
        b = jax.random.uniform(kb, (1, fan_out), jnp.float32, -bound, bound)
        return w, b

    w1, b1 = linear(ks[0], ks[1], state_dim, hidden)
    w2, b2 = linear(ks[2], ks[3], hidden, hidden)
    w3, b3 = linear(ks[4], ks[5], hidden, action_dim)
    return {"w1": w1, "b1": b1, "w2": w2, "b2": b2, "w3": w3, "b3": b3}


def actor_reference_f32(state, params, max_action):
    h1 = jnp.maximum(state @ params["w1"] + params["b1"], 0.0)
    h2 = jnp.maximum(h1 @ params["w2"] + params["b2"], 0.0)
    return max_action * jnp.tanh(h2 @ params["w3"] + params["b3"])


def actor_reference_bf16(state, params, max_action):
    """Same bf16-input / f32-accumulate recipe as the kernel (tight check)."""
    c = lambda a: a.astype(jnp.bfloat16)
    h1 = jnp.maximum(
        jnp.dot(c(state), c(params["w1"]),
                preferred_element_type=jnp.float32) + params["b1"], 0.0)
    h2 = jnp.maximum(
        jnp.dot(c(h1), c(params["w2"]),
                preferred_element_type=jnp.float32) + params["b2"], 0.0)
    h3 = jnp.dot(c(h2), c(params["w3"]),
                 preferred_element_type=jnp.float32) + params["b3"]
    return max_action * jnp.tanh(h3)


def _check(out, state, params, max_action):
    ref_bf16 = actor_reference_bf16(state, params, max_action)
    assert jnp.allclose(out, ref_bf16, atol=5e-3, rtol=5e-3), \
        "mismatch vs bf16-matched reference"
    ref_f32 = actor_reference_f32(state, params, max_action)
    assert jnp.allclose(out, ref_f32, atol=1e-1, rtol=1e-1), \
        "mismatch vs f32 reference"


if __name__ == "__main__":
    key = jax.random.PRNGKey(0)
    k_params, k_state, k_state2 = jax.random.split(key, 3)

    state_dim = 16
    action_dim = 8
    max_action = 2.0

    params = init_actor_params(k_params, state_dim, action_dim)
    packed = pack_actor_params(params)

    # Small-batch / rollout regime: single grid step.
    batch = 8
    state = jax.random.normal(k_state, (batch, state_dim), dtype=jnp.float32)
    out = actor_forward(state, packed, max_action)
    out = jax.block_until_ready(out)
    assert out.shape == (batch, action_dim)
    _check(out, state, params, max_action)

    # Tiled regime: exercises batch padding + multi-step "parallel" grid.
    batch2 = 300
    state2 = jax.random.normal(k_state2, (batch2, state_dim), dtype=jnp.float32)
    out2 = actor_forward(state2, packed, max_action)
    out2 = jax.block_until_ready(out2)
    assert out2.shape == (batch2, action_dim)
    _check(out2, state2, params, max_action)

    print("KERNEL_OK")
</pallas_src>

<mosaic_0001>
module attributes {stable_mosaic.version = 11 : i64} {
  func.func @_actor_kernel(%arg0: i32, %arg1: memref<8x128xbf16, #tpu.memory_space<vmem>>, %arg2: memref<128x256xbf16, #tpu.memory_space<vmem>>, %arg3: memref<256x384xbf16, #tpu.memory_space<vmem>>, %arg4: memref<1x640xf32, #tpu.memory_space<vmem>>, %arg5: memref<8x128xf32, #tpu.memory_space<vmem>>) attributes {dimension_semantics = [#tpu.dimension_semantics<parallel>], iteration_bounds = array<i64: 1>, scalar_prefetch = 0 : i64, scratch_operands = 0 : i64, tpu.core_type = #tpu.core_type<tc>, window_params = [{transform_indices = @transform_0, window_bounds = array<i64: 8, 128>}, {pipeline_mode = #tpu.pipeline_mode<synchronous>, transform_indices = @transform_1, window_bounds = array<i64: 128, 256>}, {pipeline_mode = #tpu.pipeline_mode<synchronous>, transform_indices = @transform_2, window_bounds = array<i64: 256, 384>}, {pipeline_mode = #tpu.pipeline_mode<synchronous>, transform_indices = @transform_3, window_bounds = array<i64: 1, 640>}, {transform_indices = @transform_4, window_bounds = array<i64: 8, 128>}]} {
    %c0 = arith.constant 0 : index
    %c0_0 = arith.constant 0 : index
    %0 = vector.load %arg1[%c0, %c0_0] : memref<8x128xbf16, #tpu.memory_space<vmem>>, vector<8x128xbf16>
    %c0_1 = arith.constant 0 : index
    %c0_2 = arith.constant 0 : index
    %1 = vector.load %arg2[%c0_1, %c0_2] : memref<128x256xbf16, #tpu.memory_space<vmem>>, vector<128x256xbf16>
    %cst = arith.constant dense<0.000000e+00> : vector<8x256xf32>
    %2 = tpu.matmul %0, %1, %cst {dimension_numbers = #tpu.dot_dimension_numbers<[1], [0], [0], [1], [0, 0, 1, 1], [], []>} : vector<8x128xbf16>, vector<128x256xbf16>, vector<8x256xf32> -> vector<8x256xf32>
    %c0_3 = arith.constant 0 : index
    %c0_4 = arith.constant 0 : index
    %3 = vector.load %arg4[%c0_3, %c0_4] : memref<1x640xf32, #tpu.memory_space<vmem>>, vector<1x256xf32>
    %4 = vector.broadcast %3 : vector<1x256xf32> to vector<8x256xf32>
    %5 = arith.addf %2, %4 : vector<8x256xf32>
    %cst_5 = arith.constant 0.000000e+00 : f32
    %6 = vector.broadcast %cst_5 : f32 to vector<8x256xf32>
    %7 = arith.maximumf %5, %6 : vector<8x256xf32>
    %8 = arith.truncf %7 : vector<8x256xf32> to vector<8x256xbf16>
    %c0_6 = arith.constant 0 : index
    %c0_7 = arith.constant 0 : index
    %9 = vector.load %arg3[%c0_6, %c0_7] : memref<256x384xbf16, #tpu.memory_space<vmem>>, vector<256x256xbf16>
    %cst_8 = arith.constant dense<0.000000e+00> : vector<8x256xf32>
    %10 = tpu.matmul %8, %9, %cst_8 {dimension_numbers = #tpu.dot_dimension_numbers<[1], [0], [0], [1], [0, 0, 1, 1], [], []>} : vector<8x256xbf16>, vector<256x256xbf16>, vector<8x256xf32> -> vector<8x256xf32>
    %c0_9 = arith.constant 0 : index
    %c256 = arith.constant 256 : index
    %11 = vector.load %arg4[%c0_9, %c256] : memref<1x640xf32, #tpu.memory_space<vmem>>, vector<1x256xf32>
    %12 = vector.broadcast %11 : vector<1x256xf32> to vector<8x256xf32>
    %13 = arith.addf %10, %12 : vector<8x256xf32>
    %cst_10 = arith.constant 0.000000e+00 : f32
    %14 = vector.broadcast %cst_10 : f32 to vector<8x256xf32>
    %15 = arith.maximumf %13, %14 : vector<8x256xf32>
    %16 = arith.truncf %15 : vector<8x256xf32> to vector<8x256xbf16>
    %c0_11 = arith.constant 0 : index
    %c256_12 = arith.constant 256 : index
    %17 = vector.load %arg3[%c0_11, %c256_12] : memref<256x384xbf16, #tpu.memory_space<vmem>>, vector<256x128xbf16>
    %cst_13 = arith.constant dense<0.000000e+00> : vector<8x128xf32>
    %18 = tpu.matmul %16, %17, %cst_13 {dimension_numbers = #tpu.dot_dimension_numbers<[1], [0], [0], [1], [0, 0, 1, 1], [], []>} : vector<8x256xbf16>, vector<256x128xbf16>, vector<8x128xf32> -> vector<8x128xf32>
    %c0_14 = arith.constant 0 : index
    %c512 = arith.constant 512 : index
    %19 = vector.load %arg4[%c0_14, %c512] : memref<1x640xf32, #tpu.memory_space<vmem>>, vector<1x128xf32>
    %20 = vector.broadcast %19 : vector<1x128xf32> to vector<8x128xf32>
    %21 = arith.addf %18, %20 : vector<8x128xf32>
    %22 = math.tanh %21 : vector<8x128xf32>
    %cst_15 = arith.constant 2.000000e+00 : f32
    %23 = vector.broadcast %cst_15 : f32 to vector<8x128xf32>
    %24 = arith.mulf %23, %22 : vector<8x128xf32>
    %c0_16 = arith.constant 0 : index
    %c0_17 = arith.constant 0 : index
    %25 = vector.load %arg5[%c0_16, %c0_17] : memref<8x128xf32, #tpu.memory_space<vmem>>, vector<8x128xf32>
    tpu.vector_store %arg5[%c0_16, %c0_17], %24 {strides = array<i32>} : memref<8x128xf32, #tpu.memory_space<vmem>>, vector<8x128xf32>,
    return
  }
  func.func @transform_0(%arg0: i32) -> (i32, i32) {
    %c0_i32 = arith.constant 0 : i32
    %c0_i32_0 = arith.constant 0 : i32
    return %arg0, %c0_i32 : i32, i32
  }
  func.func @transform_1(%arg0: i32) -> (i32, i32) {
    %c0_i32 = arith.constant 0 : i32
    %c0_i32_0 = arith.constant 0 : i32
    %c0_i32_1 = arith.constant 0 : i32
    return %c0_i32, %c0_i32_0 : i32, i32
  }
  func.func @transform_2(%arg0: i32) -> (i32, i32) {
    %c0_i32 = arith.constant 0 : i32
    %c0_i32_0 = arith.constant 0 : i32
    %c0_i32_1 = arith.constant 0 : i32
    return %c0_i32, %c0_i32_0 : i32, i32
  }
  func.func @transform_3(%arg0: i32) -> (i32, i32) {
    %c0_i32 = arith.constant 0 : i32
    %c0_i32_0 = arith.constant 0 : i32
    %c0_i32_1 = arith.constant 0 : i32
    return %c0_i32, %c0_i32_0 : i32, i32
  }
  func.func @transform_4(%arg0: i32) -> (i32, i32) {
    %c0_i32 = arith.constant 0 : i32
    %c0_i32_0 = arith.constant 0 : i32
    return %arg0, %c0_i32 : i32, i32
  }
}

</mosaic_0001>

<bundles_post_ra>
// kernel: tpu_custom_call.1
= control target key start
LH: loop header
LB: loop body
LE: loop exit
PB: predicated region body
PF: predicated region fallthrough
CT: control target
= control target key end

     0   :  { %9 = vsyncpa [#allocation3], 0  ;;  %s982_s0 = inlined_call_operand.hbm [shape: bf16[8,128], index: 0, kind: input, shape index: {}]   ;;  %s983_s1 = inlined_call_operand.hbm [shape: bf16[128,256], index: 1, kind: input, shape index: {}]   ;;  %s984_s2 = inlined_call_operand.hbm [shape: bf16[256,384], index: 2, kind: input, shape index: {}]   ;;  %s985_s3 = inlined_call_operand.vmem [shape: f32[1,640], index: 3, kind: input, shape index: {}]   ;;  %s986_s4 = inlined_call_operand.hbm [shape: f32[8,128], index: 4, kind: output, shape index: {}]  }
   0x1   :  { %10 = vsyncpa [#allocation6], 0 }
   0x2   :  { %11 = vsyncpa [#allocation4], 0  ;;  %s927_s15 = smov [#allocation5]  }
   0x3   :  { %s27_s16 = sshll.u32 %s927_s15, 4  ;;  %s28_s16 = int_to_ptr.vmem [resolvable:$true] %s27_s16 }
   0x4   :  { %s849_s17 = scalar_lea.vmem %s28_s16, 2048  ;;  %p854_p1 = scmp.lt.s32.totalorder %s28_s16, %s28_s16 }
   0x5   :  { %p850_p0 = scmp.ne.s32.totalorder %s28_s16, %s849_s17  ;;  %p855_p2 = scmp.lt.s32.totalorder %s849_s17, %s849_s17 }
   0x7   :  { %p856_p3 = por %p855_p2, %p854_p1 }
   0x9   :  { %p857_p4 = pnand %p856_p3, %p850_p0 }
   0xb   :  { %860 = shalt.err (!%p857_p4)
}
   0xc   :  { %s928_s18 = smov 128   ;;  %s929_s19 = smov 8  }
   0xd   :  { %33 = dma.hbm_to_vmem [thread:$0]  %s983_s1, 2048, %s28_s16, [#allocation6], %s928_s18, %s928_s18, %s929_s19  }
   0xe   :  { %s930_s22 = smov [#allocation2]   ;;  %s931_s24 = smov [#allocation7]  }
   0xf   :  { %s18_s23 = sshll.u32 %s930_s22, 4  ;;  %s39_s25 = sshll.u32 %s931_s24, 4  ;;  %s19_s23 = int_to_ptr.vmem [resolvable:$true] %s18_s23  ;;  %s40_s25 = int_to_ptr.vmem [resolvable:$true] %s39_s25 }
  0x10   :  { %s869_s26 = scalar_lea.vmem %s19_s23, 64  ;;  %p874_p6 = scmp.lt.s32.totalorder %s19_s23, %s19_s23 }
  0x11   :  { %p870_p5 = scmp.ne.s32.totalorder %s19_s23, %s869_s26  ;;  %p875_p7 = scmp.lt.s32.totalorder %s869_s26, %s869_s26 }
  0x13   :  { %p876_p8 = por %p875_p7, %p874_p6 }
  0x15   :  { %p877_p9 = pnand %p876_p8, %p870_p5 }
  0x17   :  { %880 = shalt.err (!%p877_p9)
}
  0x18   :  { %21 = dma.hbm_to_vmem [thread:$0]  %s982_s0, 64, %s19_s23, [#allocation3]  }
  0x19   :  { %s889_s29 = scalar_lea.vmem %s40_s25, 6144  ;;  %p894_p11 = scmp.lt.s32.totalorder %s40_s25, %s40_s25 }
  0x1a   :  { %p890_p10 = scmp.ne.s32.totalorder %s40_s25, %s889_s29  ;;  %p895_p12 = scmp.lt.s32.totalorder %s889_s29, %s889_s29 }
  0x1c   :  { %p896_p13 = por %p895_p12, %p894_p11 }
  0x1e   :  { %p897_p0 = pnand %p896_p13, %p890_p10 }
  0x20   :  { %900 = shalt.err (!%p897_p0)
}
  0x21   :  { %s932_s1 = smov 192   ;;  %s933_s30 = smov 12  }
  0x22   :  { %45 = dma.hbm_to_vmem [thread:$0]  %s984_s2, 6144, %s40_s25, [#allocation6], %s932_s1, %s932_s1, %s933_s30  }
  0x23   :  { %921 = dma.done.wait [#allocation3], 64  }
  0x24   :  { %922 = vsyncadd [#allocation3], 4294967232 }
  0x25   :  { %923 = dma.done.wait [#allocation6], 8192  }
  0x26   :  { %924 = vsyncadd [#allocation6], 4294959104  ;;  %v934_v0 = vmov 0   ;;  %v751_v1 = vld [vmem:[#allocation5 + $0x74] ss:$8 sps:$4 sm:$0xff]   ;;  %v77_v62 = vlaneseq  ;;  %s935_s11 = smov [#allocation8]  }
  0x27   :  { %199 = vmatprep.mubr.bf16.mxu0 %v934_v0  ;;  %v753_v2 = vld [vmem:[#allocation5 + $0x70] ss:$8 sps:$4 sm:$0xff]   ;;  %167 = vmatprep.subr.bf16.mxu0 %v751_v1  ;;  %v754_v3 = vld [vmem:[#allocation5 + $0x64] ss:$8 sps:$4 sm:$0xff]   ;;  %v756_v4 = vld [vmem:[#allocation5 + $0x60] ss:$8 sps:$4 sm:$0xff]  }
  0x28   :  { %168 = vmatpush1.bf16.msra.mxu0 %v753_v2  ;;  %v757_v5 = vld [vmem:[#allocation5 + $0x54] ss:$8 sps:$4 sm:$0xff]   ;;  %v759_v6 = vld [vmem:[#allocation5 + $0x50] ss:$8 sps:$4 sm:$0xff]   ;;  %v760_v7 = vld [vmem:[#allocation5 + $0x44] ss:$8 sps:$4 sm:$0xff]  }
  0x29   :  { %169 = vmatprep.subr.bf16.mxu0 %v754_v3  ;;  %v762_v8 = vld [vmem:[#allocation5 + $0x40] ss:$8 sps:$4 sm:$0xff]   ;;  %v763_v9 = vld [vmem:[#allocation5 + $0x34] ss:$8 sps:$4 sm:$0xff]   ;;  %v775_v10 = vld [vmem:[#allocation7 + $0xac] ss:$12 sps:$4 sm:$0xff]  }
  0x2a   :  { %v777_v11 = vld [vmem:[#allocation7 + $0xa8] ss:$12 sps:$4 sm:$0xff]   ;;  %416 = vmatprep.subr.bf16.mxu1 %v775_v10  ;;  %v765_v13 = vld [vmem:[#allocation5 + $0x30] ss:$8 sps:$4 sm:$0xff]   ;;  %v766_v16 = vld [vmem:[#allocation5 + $0x24] ss:$8 sps:$4 sm:$0xff]  }
  0x2b   :  { %v778_v12 = vld [vmem:[#allocation7 + $0x94] ss:$12 sps:$4 sm:$0xff]   ;;  %417 = vmatpush1.bf16.msra.mxu1 %v777_v11  ;;  %v780_v14 = vld [vmem:[#allocation7 + $0x90] ss:$12 sps:$4 sm:$0xff]   ;;  %v783_v18 = vld [vmem:[#allocation7 + $0x78] ss:$12 sps:$4 sm:$0xff]  }
  0x2c   :  { %170 = vmatpush1.bf16.msra.mxu0 %v756_v4  ;;  %418 = vmatprep.subr.bf16.mxu1 %v778_v12  ;;  %v781_v15 = vld [vmem:[#allocation7 + $0x7c] ss:$12 sps:$4 sm:$0xff]   ;;  %v784_v19 = vld [vmem:[#allocation7 + $0x64] ss:$12 sps:$4 sm:$0xff]   ;;  %v786_v22 = vld [vmem:[#allocation7 + $0x60] ss:$12 sps:$4 sm:$0xff]  }
  0x2d   :  { %171 = vmatprep.subr.bf16.mxu0 %v757_v5  ;;  %v768_v17 = vld [vmem:[#allocation5 + $0x20] ss:$8 sps:$4 sm:$0xff]   ;;  %v769_v20 = vld [vmem:[#allocation5 + $0x14] ss:$8 sps:$4 sm:$0xff]   ;;  %v771_v21 = vld [vmem:[#allocation5 + $0x10] ss:$8 sps:$4 sm:$0xff]  }
  0x2e   :  { %v787_v23 = vld [vmem:[#allocation7 + $0x4c] ss:$12 sps:$4 sm:$0xff]   ;;  %v774_v25 = vld [vmem:[#allocation5] ss:$8 sps:$4 sm:$0xff]   ;;  %v58_v28 = vld [vmem:[#allocation2] sm:$0xf] }
  0x2f   :  { %419 = vmatpush1.bf16.msra.mxu1 %v780_v14  ;;  %v772_v24 = vld [vmem:[#allocation5 + $0x4] ss:$8 sps:$4 sm:$0xff]   ;;  %v789_v26 = vld [vmem:[#allocation7 + $0x48] ss:$12 sps:$4 sm:$0xff]   ;;  %v792_v29 = vld [vmem:[#allocation7 + $0x30] ss:$12 sps:$4 sm:$0xff]  }
  0x30   :  { %172 = vmatpush1.bf16.msra.mxu0 %v759_v6  ;;  %420 = vmatprep.subr.bf16.mxu1 %v781_v15  ;;  %v790_v27 = vld [vmem:[#allocation7 + $0x34] ss:$12 sps:$4 sm:$0xff]   ;;  %v793_v30 = vld [vmem:[#allocation7 + $0x1c] ss:$12 sps:$4 sm:$0xff]   ;;  %v795_v31 = vld [vmem:[#allocation7 + $0x18] ss:$12 sps:$4 sm:$0xff]  }
  0x31   :  { %173 = vmatprep.subr.bf16.mxu0 %v760_v7  ;;  %v796_v32 = vld [vmem:[#allocation7 + $0x4] ss:$12 sps:$4 sm:$0xff]   ;;  %v798_v33 = vld [vmem:[#allocation7] ss:$12 sps:$4 sm:$0xff]   ;;  %v801_v35 = vld [vmem:[#allocation7 + $0x168] ss:$12 sps:$4 sm:$0xff]  }
  0x32   :  { %v799_v34 = vld [vmem:[#allocation7 + $0x16c] ss:$12 sps:$4 sm:$0xff]   ;;  %v802_v36 = vld [vmem:[#allocation7 + $0x154] ss:$12 sps:$4 sm:$0xff]   ;;  %v804_v37 = vld [vmem:[#allocation7 + $0x150] ss:$12 sps:$4 sm:$0xff]  }
  0x33   :  { %421 = vmatpush1.bf16.msra.mxu1 %v783_v18  ;;  %v805_v38 = vld [vmem:[#allocation7 + $0x13c] ss:$12 sps:$4 sm:$0xff]   ;;  %v807_v39 = vld [vmem:[#allocation7 + $0x138] ss:$12 sps:$4 sm:$0xff]   ;;  %v810_v41 = vld [vmem:[#allocation7 + $0x120] ss:$12 sps:$4 sm:$0xff]  }
  0x34   :  { %174 = vmatpush1.bf16.msra.mxu0 %v762_v8  ;;  %422 = vmatprep.subr.bf16.mxu1 %v784_v19  ;;  %v808_v40 = vld [vmem:[#allocation7 + $0x124] ss:$12 sps:$4 sm:$0xff]   ;;  %v811_v42 = vld [vmem:[#allocation7 + $0x10c] ss:$12 sps:$4 sm:$0xff]   ;;  %v813_v43 = vld [vmem:[#allocation7 + $0x108] ss:$12 sps:$4 sm:$0xff]  }
  0x35   :  { %175 = vmatprep.subr.bf16.mxu0 %v763_v9  ;;  %v814_v44 = vld [vmem:[#allocation7 + $0xf4] ss:$12 sps:$4 sm:$0xff]   ;;  %v816_v45 = vld [vmem:[#allocation7 + $0xf0] ss:$12 sps:$4 sm:$0xff]   ;;  %v819_v47 = vld [vmem:[#allocation7 + $0xd8] ss:$12 sps:$4 sm:$0xff]  }
  0x36   :  { %v817_v46 = vld [vmem:[#allocation7 + $0xdc] ss:$12 sps:$4 sm:$0xff]   ;;  %v820_v48 = vld [vmem:[#allocation7 + $0xc4] ss:$12 sps:$4 sm:$0xff]   ;;  %v822_v49 = vld [vmem:[#allocation7 + $0xc0] ss:$12 sps:$4 sm:$0xff]  }
  0x37   :  { %423 = vmatpush1.bf16.msra.mxu1 %v786_v22  ;;  %v823_v50 = vld [vmem:[#allocation7 + $0x170] ss:$12 sps:$4 sm:$0xff]   ;;  %v825_v52 = vld [vmem:[#allocation7 + $0x158] ss:$12 sps:$4 sm:$0xff]   ;;  %v827_v54 = vld [vmem:[#allocation7 + $0x140] ss:$12 sps:$4 sm:$0xff]  }
  0x38   :  { %176 = vmatpush1.bf16.msra.mxu0 %v765_v13  ;;  %424 = vmatprep.subr.bf16.mxu1 %v787_v23  ;;  %v824_v51 = vld [vmem:[#allocation7 + $0xb0] ss:$12 sps:$4 sm:$0xff]   ;;  %v826_v53 = vld [vmem:[#allocation7 + $0x98] ss:$12 sps:$4 sm:$0xff]   ;;  %v828_v55 = vld [vmem:[#allocation7 + $0x80] ss:$12 sps:$4 sm:$0xff]  }
  0x39   :  { %177 = vmatprep.subr.bf16.mxu0 %v766_v16  ;;  %v829_v56 = vld [vmem:[#allocation7 + $0x128] ss:$12 sps:$4 sm:$0xff]   ;;  %v831_v58 = vld [vmem:[#allocation7 + $0x110] ss:$12 sps:$4 sm:$0xff]   ;;  %v833_v60 = vld [vmem:[#allocation7 + $0xf8] ss:$12 sps:$4 sm:$0xff]  }
  0x3a   :  { %v830_v57 = vld [vmem:[#allocation7 + $0x68] ss:$12 sps:$4 sm:$0xff]   ;;  %v832_v59 = vld [vmem:[#allocation7 + $0x50] ss:$12 sps:$4 sm:$0xff]   ;;  %v834_v61 = vld [vmem:[#allocation7 + $0x38] ss:$12 sps:$4 sm:$0xff]  }
  0x3b   :  { %425 = vmatpush1.bf16.msra.mxu1 %v789_v26  ;;  %v78_v63 = vshrl.u32 %v77_v62, 7  ;;  %v75_v1 = vld [vmem:[%s985_s3] sm:$0x3]  ;;  %v835_v15 = vld [vmem:[#allocation7 + $0xe0] ss:$12 sps:$4 sm:$0xff]   ;;  %s645_s12 = sshll.u32 %s935_s11, 4  ;;  %s646_s12 = int_to_ptr.vmem [resolvable:$true] %s645_s12 }
  0x3c   :  { %178 = vmatpush1.bf16.msra.mxu0 %v768_v17  ;;  %426 = vmatprep.subr.bf16.mxu1 %v790_v27  ;;  %v836_v16 = vld [vmem:[#allocation7 + $0x20] ss:$12 sps:$4 sm:$0xff]   ;;  %v837_v17 = vld [vmem:[#allocation7 + $0xc8] ss:$12 sps:$4 sm:$0xff]   ;;  %v244_v19 = vld [vmem:[%s985_s3 + $0x2] sm:$0x3]  ;;  %p906_p2 = scmp.lt.s32.totalorder %s646_s12, %s646_s12 }
  0x3d   :  { %179 = vmatprep.subr.bf16.mxu0 %v769_v20  ;;  %v79_v0 = vsub.s32 0, %v78_v63  ;;  %v83_v2 = vsub.s32 1, %v78_v63  ;;  %v838_v18 = vld [vmem:[#allocation7 + $0x8] ss:$12 sps:$4 sm:$0xff]   ;;  %s901_s13 = scalar_lea.vmem %s646_s12, 128 }
  0x3e   :  { %p902_p1 = scmp.ne.s32.totalorder %s646_s12, %s901_s13  ;;  %p907_p3 = scmp.lt.s32.totalorder %s901_s13, %s901_s13 }
  0x3f   :  { %427 = vmatpush1.bf16.msra.mxu1 %v792_v29  ;;  %v80_v3 = vrot.slane %v75_v1, %v79_v0  ;;  %v84_v4 = vrot.slane %v75_v1, %v83_v2  ;;  %v249_v20 = vrot.slane %v244_v19, %v79_v0 }
  0x40   :  { %180 = vmatpush1.bf16.msra.mxu0 %v771_v21  ;;  %428 = vmatprep.subr.bf16.mxu1 %v793_v30  ;;  %v253_v21 = vrot.slane %v244_v19, %v83_v2  ;;  %p908_p4 = por %p907_p3, %p906_p2 }
  0x41   :  { %181 = vmatprep.subr.bf16.mxu0 %v772_v24 }
  0x42   :  { %p909_p5 = pnand %p908_p4, %p902_p1 }
  0x43   :  { %429 = vmatpush1.bf16.msra.mxu1 %v795_v31 }
  0x44   :  { %182 = vmatpush1.bf16.msra.mxu0 %v774_v25  ;;  %430 = vmatprep.subr.bf16.mxu1 %v796_v32 }
  0x45   :  { %720 = vmatprep.subr.bf16.mxu0 %v823_v50 }
  0x47   :  { %200 = vmatmul.mubr.bf16.vlgmr.msra.gmra.mxu0 %v58_v28  ;;  %431 = vmatpush1.bf16.msra.mxu1 %v798_v33  ;;  %v703_v33 = vld [vmem:[%s985_s3 + $0x4] ss:$0 sm:$0xff] }
  0x48   :  { %432 = vmatprep.subr.bf16.mxu1 %v799_v34  ;;  %721 = vmatpush3.bf16.msra.mxu0 %v824_v51 }
  0x49   :  { %722 = vmatprep.subr.bf16.mxu0 %v825_v52 }
  0x4b   :  { %433 = vmatpush2.bf16.msra.mxu1 %v801_v35 }
  0x4c   :  { %434 = vmatprep.subr.bf16.mxu1 %v802_v36  ;;  %723 = vmatpush3.bf16.msra.mxu0 %v826_v53 }
  0x4d   :  { %724 = vmatprep.subr.bf16.mxu0 %v827_v54 }
  0x4f   :  { %435 = vmatpush2.bf16.msra.mxu1 %v804_v37 }
  0x50   :  { %436 = vmatprep.subr.bf16.mxu1 %v805_v38  ;;  %725 = vmatpush3.bf16.msra.mxu0 %v828_v55 }
  0x51   :  { %726 = vmatprep.subr.bf16.mxu0 %v829_v56 }
  0x53   :  { %437 = vmatpush2.bf16.msra.mxu1 %v807_v39 }
  0x54   :  { %438 = vmatprep.subr.bf16.mxu1 %v808_v40  ;;  %727 = vmatpush3.bf16.msra.mxu0 %v830_v57 }
  0x55   :  { %728 = vmatprep.subr.bf16.mxu0 %v831_v58 }
  0x57   :  { %439 = vmatpush2.bf16.msra.mxu1 %v810_v41 }
  0x58   :  { %440 = vmatprep.subr.bf16.mxu1 %v811_v42  ;;  %729 = vmatpush3.bf16.msra.mxu0 %v832_v59 }
  0x59   :  { %730 = vmatprep.subr.bf16.mxu0 %v833_v60 }
  0x5b   :  { %441 = vmatpush2.bf16.msra.mxu1 %v813_v43 }
  0x5c   :  { %442 = vmatprep.subr.bf16.mxu1 %v814_v44  ;;  %731 = vmatpush3.bf16.msra.mxu0 %v834_v61 }
  0x5d   :  { %732 = vmatprep.subr.bf16.mxu0 %v835_v15 }
  0x5f   :  { %443 = vmatpush2.bf16.msra.mxu1 %v816_v45 }
  0x60   :  { %444 = vmatprep.subr.bf16.mxu1 %v817_v46  ;;  %733 = vmatpush3.bf16.msra.mxu0 %v836_v16 }
  0x61   :  { %734 = vmatprep.subr.bf16.mxu0 %v837_v17 }
  0x63   :  { %445 = vmatpush2.bf16.msra.mxu1 %v819_v47 }
  0x64   :  { %446 = vmatprep.subr.bf16.mxu1 %v820_v48  ;;  %735 = vmatpush3.bf16.msra.mxu0 %v838_v18 }
  0x67   :  { %447 = vmatpush2.bf16.msra.mxu1 %v822_v49 }
 0x107   :  { %v201_v5 = vpop.f32.mrf.mxu0 }
 0x108   :  { %v202_v6 = vadd.f32 %v201_v5, %v80_v3 }
 0x109   :  { %v203_v7 = vpop.f32.mrf.mxu0 }
 0x10a   :  { %v204_v8 = vadd.f32 %v203_v7, %v84_v4  ;;  %v208_v9 = vmax.f32 %v202_v6, 0.0 }
 0x10b   :  { %v205_v10 = vpop.f32.mrf.mxu0 }
 0x10c   :  { %v209_v11 = vmax.f32 %v204_v8, 0.0  ;;  %v210_v14 = vpack.c.bf16 %v208_v9, %v208_v9 }
 0x10d   :  { %v206_v12 = vpop.f32.mrf.mxu0 }
 0x10e   :  { %v211_v13 = vpack.c.bf16 %v209_v11, %v209_v11 }
 0x110   :  { %448 = vmatprep.mubr.bf16.mxu1 %v211_v13 }
 0x111   :  { %449 = vmatmul.mubr.bf16.vlgmr.msra.gmra.mxu1 %v210_v14 }
 0x1d1   :  { %v450_v22 = vpop.f32.mrf.mxu1 }
 0x1d2   :  { %v451_v23 = vadd.f32 %v450_v22, %v249_v20 }
 0x1d3   :  { %v452_v24 = vpop.f32.mrf.mxu1 }
 0x1d4   :  { %v453_v25 = vadd.f32 %v452_v24, %v253_v21  ;;  %v457_v26 = vmax.f32 %v451_v23, 0.0 }
 0x1d5   :  { %v454_v27 = vpop.f32.mrf.mxu1 }
 0x1d6   :  { %v458_v28 = vmax.f32 %v453_v25, 0.0  ;;  %v459_v31 = vpack.c.bf16 %v457_v26, %v457_v26 }
 0x1d7   :  { %v455_v29 = vpop.f32.mrf.mxu1 }
 0x1d8   :  { %v460_v30 = vpack.c.bf16 %v458_v28, %v458_v28 }
 0x1da   :  { %628 = vmatprep.mubr.bf16.mxu0 %v460_v30 }
 0x1db   :  { %629 = vmatmul.mubr.bf16.vlgmr.msra.gmra.mxu0 %v459_v31 }
 0x29b   :  { %v736_v32 = vpop.f32.mrf.mxu0 }
 0x29d   :  { %v737_v34 = vpop.f32.mrf.mxu0 }
 0x29e   :  { %v738_v35 = vadd.f32 %v737_v34, %v736_v32 }
 0x29f   :  { %v739_v36 = vpop.f32.mrf.mxu0 }
 0x2a0   :  { %v631_v37 = vadd.f32 %v738_v35, %v703_v33 }
 0x2a1   :  { %v740_v38 = vpop.f32.mrf.mxu0 }
 0x2a2   :  { %839 = vtanh.f32 %v631_v37 }
 0x2af   :  { %v840_v39 = vpop.eup %839 }
 0x2b0   :  { %v637_v40 = vmul.f32 2.0, %v840_v39 }
 0x2b2   :  { %638 = vst [vmem:[#allocation8] sm:$0xff] %v637_v40 }
 0x2b3   :  { %912 = shalt.err (!%p909_p5)
}
 0x2b4   :  { %648 = dma.vmem_to_hbm [thread:$0]  %s646_s12, 128, %s986_s4, [#allocation4]  }
 0x2b5   :  { %925 = dma.done.wait [#allocation4], 128  }
 0x2b6   :  { %926 = vsyncadd [#allocation4], 4294967168 }
 0x2b7   :  { %652 = vsyncpa [#allocation3], 1 }
 0x2b8   :  { %653 = vsyncpa [#allocation6], 1 }
 0x2b9   :  { %654 = vsyncpa [#allocation4], 1 }

</bundles_post_ra>
